<compile_context>
chip_gen: v5e
topology: v5e:2x2
jax: 0.10.0
libtpu: 0.0.40
codegen_flags: <defaults>
</compile_context>

<pallas_src>
import jax
import jax.numpy as jnp
from jax.experimental import pallas as pl
from jax.experimental.pallas import tpu as pltpu


def affine_coupling_kernel(z1_ref, z2_ref, w1_ref, b1_ref, w2_ref, b2_ref,
                           x2_ref, logdet_ref):
    z1 = z1_ref[...]                                   # [tm, d2]  bf16 (matmul only)
    z2 = z2_ref[...]                                   # [tm, d2]  f32

    # Fused layer 1: one MXU push computes both nets' hidden activations.
    h = jnp.dot(z1, w1_ref[...],
                preferred_element_type=jnp.float32) + b1_ref[...]   # [tm, 2H] f32
    h = jnp.maximum(h, 0.0)

    # Fused layer 2 (block-diagonal weight): ts = [t | s] in one MXU push.
    ts = jnp.dot(h.astype(jnp.bfloat16), w2_ref[...],
                 preferred_element_type=jnp.float32) + b2_ref[...]  # [tm, 2*d2] f32
    d2 = z2.shape[1]
    t = ts[:, :d2]
    s = ts[:, d2:]

    # x2 = z2 * exp(s) + t   (f32 on VPU/EUP) -> single full-block lane-dense store.
    x2_ref[...] = z2 * jnp.exp(s) + t

    # logdet = sum_j s[:, j], written lane-dense as (1, tm): contract s against
    # a ones-row on the MXU (NT form) instead of a sublane->lane relayout.
    ones_row = jnp.ones((1, d2), jnp.float32)
    logdet_ref[...] = jax.lax.dot_general(
        ones_row, s, (((1,), (1,)), ((), ())),
        preferred_element_type=jnp.float32)            # [1, tm] f32


def fuse_params(p):
    """Build fused/cast weights once, outside the hot path."""
    d2, H = p["wt1"].shape
    w1 = jnp.concatenate([p["wt1"], p["ws1"]], axis=1)           # [d2, 2H]
    b1 = jnp.concatenate([p["bt1"], p["bs1"]], axis=1)           # [1, 2H]
    w2 = jnp.zeros((2 * H, 2 * d2), jnp.float32)                 # block-diagonal
    w2 = w2.at[:H, :d2].set(p["wt2"]).at[H:, d2:].set(p["ws2"])  # [2H, 2*d2]
    b2 = jnp.concatenate([p["bt2"], p["bs2"]], axis=1)           # [1, 2*d2]
    return {
        "w1": w1.astype(jnp.bfloat16),   # bf16 MXU operands, f32 accumulation
        "b1": b1,                        # biases stay f32 (VPU elementwise)
        "w2": w2.astype(jnp.bfloat16),
        "b2": b2,
    }


def affine_coupling_forward(z, fused, *, block_b=512):
    """Returns (out, log_det_jacobian) matching AffineCouplingLayer.forward."""
    B, D = z.shape
    d2 = D // 2
    H2 = fused["w1"].shape[1]            # 2*H

    # Reshape-based even/odd channel split (wrapper-side glue; contiguous
    # layout plumbing instead of a stride-2 lane gather inside the kernel).
    zr = z.reshape(B, d2, 2)
    z1 = zr[..., 0]
    z2 = zr[..., 1]

    # Batch tile.  v5e/v6e: up to ~512 rows/step fits comfortably; on v7x
    # (64 MiB VMEM) halve it (or raise vmem_limit_bytes) once D/H are large.
    tm = B if B <= block_b else block_b
    assert B % tm == 0, "batch must be a multiple of the batch tile"
    grid = (B // tm,)

    x2, logdet = pl.pallas_call(
        affine_coupling_kernel,
        out_shape=(
            jax.ShapeDtypeStruct((B, d2), jnp.float32),   # x2 only (lane-dense)
            jax.ShapeDtypeStruct((1, B), jnp.float32),    # logdet, batch on lanes
        ),
        grid_spec=pltpu.PrefetchScalarGridSpec(
            num_scalar_prefetch=0,
            grid=grid,
            in_specs=[
                pl.BlockSpec((tm, d2), lambda i: (i, 0)),       # z1 (bf16)
                pl.BlockSpec((tm, d2), lambda i: (i, 0)),       # z2 (f32)
                pl.BlockSpec((d2, H2), lambda i: (0, 0)),       # fused W1 (resident)
                pl.BlockSpec((1, H2), lambda i: (0, 0)),        # fused b1 (resident)
                pl.BlockSpec((H2, 2 * d2), lambda i: (0, 0)),   # block-diag W2
                pl.BlockSpec((1, 2 * d2), lambda i: (0, 0)),    # fused b2
            ],
            out_specs=(
                pl.BlockSpec((tm, d2), lambda i: (i, 0)),       # x2
                pl.BlockSpec((1, tm), lambda i: (0, i)),        # logdet (lane-dense)
            ),
        ),
        compiler_params=pltpu.CompilerParams(
            dimension_semantics=("parallel",),   # v7x: shard batch over both TCs
        ),
    )(z1.astype(jnp.bfloat16), z2,
      fused["w1"], fused["b1"], fused["w2"], fused["b2"])

    # x1 = z1 passthrough; concat stays in the wrapper so the kernel store is
    # a single full-block (unmasked) write.
    out = jnp.concatenate([z1, x2], axis=1)
    return out, logdet[0]


def make_params(key, d2, hidden):
    ks = jax.random.split(key, 8)
    scale1 = 1.0 / jnp.sqrt(d2)
    scale2 = 1.0 / jnp.sqrt(hidden)
    return {
        "ws1": jax.random.normal(ks[0], (d2, hidden), jnp.float32) * scale1,
        "bs1": jax.random.normal(ks[1], (1, hidden), jnp.float32) * 0.1,
        "ws2": jax.random.normal(ks[2], (hidden, d2), jnp.float32) * scale2,
        "bs2": jax.random.normal(ks[3], (1, d2), jnp.float32) * 0.1,
        "wt1": jax.random.normal(ks[4], (d2, hidden), jnp.float32) * scale1,
        "bt1": jax.random.normal(ks[5], (1, hidden), jnp.float32) * 0.1,
        "wt2": jax.random.normal(ks[6], (hidden, d2), jnp.float32) * scale2,
        "bt2": jax.random.normal(ks[7], (1, d2), jnp.float32) * 0.1,
    }


def reference_forward_f32(z, p):
    """Pure-f32 reference (exact PyTorch forward semantics)."""
    B, D = z.shape
    zr = z.reshape(B, D // 2, 2)
    z1, z2 = zr[..., 0], zr[..., 1]
    h_t = jnp.maximum(z1 @ p["wt1"] + p["bt1"], 0.0)
    t = h_t @ p["wt2"] + p["bt2"]
    h_s = jnp.maximum(z1 @ p["ws1"] + p["bs1"], 0.0)
    s = h_s @ p["ws2"] + p["bs2"]
    x2 = z2 * jnp.exp(s) + t
    return jnp.concatenate([z1, x2], axis=1), jnp.sum(s, axis=1)


def reference_forward_matched(z, p):
    """Same math with bf16 matmul operands / f32 accumulation (matches kernel)."""
    B, D = z.shape
    zr = z.reshape(B, D // 2, 2)
    z1, z2 = zr[..., 0], zr[..., 1]

    def mm(a, w):
        return jnp.dot(a.astype(jnp.bfloat16), w.astype(jnp.bfloat16),
                       preferred_element_type=jnp.float32)

    h_t = jnp.maximum(mm(z1, p["wt1"]) + p["bt1"], 0.0)
    t = mm(h_t, p["wt2"]) + p["bt2"]
    h_s = jnp.maximum(mm(z1, p["ws1"]) + p["bs1"], 0.0)
    s = mm(h_s, p["ws2"]) + p["bs2"]
    x2 = z2 * jnp.exp(s) + t
    return jnp.concatenate([z1, x2], axis=1), jnp.sum(s, axis=1)


if __name__ == "__main__":
    key = jax.random.PRNGKey(0)
    k_z, k_p = jax.random.split(key)

    B, D, H = 8, 8, 32               # batch=8, channels=8 (split 2x4), hidden=32
    z = jax.random.normal(k_z, (B, D), jnp.float32)
    params = make_params(k_p, D // 2, H)
    fused = fuse_params(params)

    out, logdet = affine_coupling_forward(z, fused)
    out = jax.block_until_ready(out)
    logdet = jax.block_until_ready(logdet)

    # Tight check against a precision-matched reference (bf16 matmuls, f32 accum).
    out_m, logdet_m = reference_forward_matched(z, params)
    assert jnp.allclose(out, out_m, atol=1e-3, rtol=1e-3), "mismatch vs matched ref"
    assert jnp.allclose(logdet, logdet_m, atol=1e-3, rtol=1e-3), "logdet mismatch"

    # Loose sanity check against the pure-f32 module semantics.
    out_f, logdet_f = reference_forward_f32(z, params)
    assert jnp.allclose(out, out_f, atol=0.25, rtol=0.1), "mismatch vs f32 ref"
    assert jnp.allclose(logdet, logdet_f, atol=0.25, rtol=0.1), "logdet vs f32 ref"

    print("KERNEL_OK")
</pallas_src>

<mosaic_0001>
module attributes {stable_mosaic.version = 11 : i64} {
  func.func @affine_coupling_kernel(%arg0: i32, %arg1: memref<8x4xbf16, #tpu.memory_space<vmem>>, %arg2: memref<8x4xf32, #tpu.memory_space<vmem>>, %arg3: memref<4x64xbf16, #tpu.memory_space<vmem>>, %arg4: memref<1x64xf32, #tpu.memory_space<vmem>>, %arg5: memref<64x8xbf16, #tpu.memory_space<vmem>>, %arg6: memref<1x8xf32, #tpu.memory_space<vmem>>, %arg7: memref<8x4xf32, #tpu.memory_space<vmem>>, %arg8: memref<1x8xf32, #tpu.memory_space<vmem>>) attributes {dimension_semantics = [#tpu.dimension_semantics<parallel>], iteration_bounds = array<i64: 1>, scalar_prefetch = 0 : i64, scratch_operands = 0 : i64, tpu.core_type = #tpu.core_type<tc>, window_params = [{transform_indices = @transform_0, window_bounds = array<i64: 8, 4>}, {transform_indices = @transform_1, window_bounds = array<i64: 8, 4>}, {pipeline_mode = #tpu.pipeline_mode<synchronous>, transform_indices = @transform_2, window_bounds = array<i64: 4, 64>}, {pipeline_mode = #tpu.pipeline_mode<synchronous>, transform_indices = @transform_3, window_bounds = array<i64: 1, 64>}, {pipeline_mode = #tpu.pipeline_mode<synchronous>, transform_indices = @transform_4, window_bounds = array<i64: 64, 8>}, {pipeline_mode = #tpu.pipeline_mode<synchronous>, transform_indices = @transform_5, window_bounds = array<i64: 1, 8>}, {transform_indices = @transform_6, window_bounds = array<i64: 8, 4>}, {transform_indices = @transform_7, window_bounds = array<i64: 1, 8>}]} {
    %c0 = arith.constant 0 : index
    %c0_0 = arith.constant 0 : index
    %0 = vector.load %arg1[%c0, %c0_0] : memref<8x4xbf16, #tpu.memory_space<vmem>>, vector<8x4xbf16>
    %c0_1 = arith.constant 0 : index
    %c0_2 = arith.constant 0 : index
    %1 = vector.load %arg2[%c0_1, %c0_2] : memref<8x4xf32, #tpu.memory_space<vmem>>, vector<8x4xf32>
    %c0_3 = arith.constant 0 : index
    %c0_4 = arith.constant 0 : index
    %2 = vector.load %arg3[%c0_3, %c0_4] : memref<4x64xbf16, #tpu.memory_space<vmem>>, vector<4x64xbf16>
    %cst = arith.constant dense<0.000000e+00> : vector<8x64xf32>
    %3 = tpu.matmul %0, %2, %cst {dimension_numbers = #tpu.dot_dimension_numbers<[1], [0], [0], [1], [0, 0, 1, 1], [], []>} : vector<8x4xbf16>, vector<4x64xbf16>, vector<8x64xf32> -> vector<8x64xf32>
    %c0_5 = arith.constant 0 : index
    %c0_6 = arith.constant 0 : index
    %4 = vector.load %arg4[%c0_5, %c0_6] : memref<1x64xf32, #tpu.memory_space<vmem>>, vector<1x64xf32>
    %5 = vector.broadcast %4 : vector<1x64xf32> to vector<8x64xf32>
    %6 = arith.addf %3, %5 : vector<8x64xf32>
    %cst_7 = arith.constant 0.000000e+00 : f32
    %7 = vector.broadcast %cst_7 : f32 to vector<8x64xf32>
    %8 = arith.maximumf %6, %7 : vector<8x64xf32>
    %9 = arith.truncf %8 : vector<8x64xf32> to vector<8x64xbf16>
    %c0_8 = arith.constant 0 : index
    %c0_9 = arith.constant 0 : index
    %10 = vector.load %arg5[%c0_8, %c0_9] : memref<64x8xbf16, #tpu.memory_space<vmem>>, vector<64x8xbf16>
    %cst_10 = arith.constant dense<0.000000e+00> : vector<8x8xf32>
    %11 = tpu.matmul %9, %10, %cst_10 {dimension_numbers = #tpu.dot_dimension_numbers<[1], [0], [0], [1], [0, 0, 1, 1], [], []>} : vector<8x64xbf16>, vector<64x8xbf16>, vector<8x8xf32> -> vector<8x8xf32>
    %c0_11 = arith.constant 0 : index
    %c0_12 = arith.constant 0 : index
    %12 = vector.load %arg6[%c0_11, %c0_12] : memref<1x8xf32, #tpu.memory_space<vmem>>, vector<1x8xf32>
    %13 = vector.broadcast %12 : vector<1x8xf32> to vector<8x8xf32>
    %14 = arith.addf %11, %13 : vector<8x8xf32>
    %15 = vector.extract_strided_slice %14 {offsets = [0, 0], sizes = [8, 4], strides = [1, 1]} : vector<8x8xf32> to vector<8x4xf32>
    %16 = vector.extract_strided_slice %14 {offsets = [0, 4], sizes = [8, 4], strides = [1, 1]} : vector<8x8xf32> to vector<8x4xf32>
    %17 = math.exp %16 : vector<8x4xf32>
    %18 = arith.mulf %1, %17 : vector<8x4xf32>
    %19 = arith.addf %18, %15 : vector<8x4xf32>
    %c0_13 = arith.constant 0 : index
    %c0_14 = arith.constant 0 : index
    %20 = vector.load %arg7[%c0_13, %c0_14] : memref<8x4xf32, #tpu.memory_space<vmem>>, vector<8x4xf32>
    tpu.vector_store %arg7[%c0_13, %c0_14], %19 {strides = array<i32>} : memref<8x4xf32, #tpu.memory_space<vmem>>, vector<8x4xf32>,
    %cst_15 = arith.constant 1.000000e+00 : f32
    %21 = vector.broadcast %cst_15 : f32 to vector<1x4xf32>
    %cst_16 = arith.constant dense<0.000000e+00> : vector<1x8xf32>
    %22 = tpu.matmul %21, %16, %cst_16 {dimension_numbers = #tpu.dot_dimension_numbers<[1], [1], [0], [0], [0, 0, 1, 0], [], []>} : vector<1x4xf32>, vector<8x4xf32>, vector<1x8xf32> -> vector<1x8xf32>
    %c0_17 = arith.constant 0 : index
    %c0_18 = arith.constant 0 : index
    %23 = vector.load %arg8[%c0_17, %c0_18] : memref<1x8xf32, #tpu.memory_space<vmem>>, vector<1x8xf32>
    tpu.vector_store %arg8[%c0_17, %c0_18], %22 {strides = array<i32>} : memref<1x8xf32, #tpu.memory_space<vmem>>, vector<1x8xf32>,
    return
  }
  func.func @transform_0(%arg0: i32) -> (i32, i32) {
    %c0_i32 = arith.constant 0 : i32
    %c0_i32_0 = arith.constant 0 : i32
    return %arg0, %c0_i32 : i32, i32
  }
  func.func @transform_1(%arg0: i32) -> (i32, i32) {
    %c0_i32 = arith.constant 0 : i32
    %c0_i32_0 = arith.constant 0 : i32
    return %arg0, %c0_i32 : i32, i32
  }
  func.func @transform_2(%arg0: i32) -> (i32, i32) {
    %c0_i32 = arith.constant 0 : i32
    %c0_i32_0 = arith.constant 0 : i32
    %c0_i32_1 = arith.constant 0 : i32
    return %c0_i32, %c0_i32_0 : i32, i32
  }
  func.func @transform_3(%arg0: i32) -> (i32, i32) {
    %c0_i32 = arith.constant 0 : i32
    %c0_i32_0 = arith.constant 0 : i32
    %c0_i32_1 = arith.constant 0 : i32
    return %c0_i32, %c0_i32_0 : i32, i32
  }
  func.func @transform_4(%arg0: i32) -> (i32, i32) {
    %c0_i32 = arith.constant 0 : i32
    %c0_i32_0 = arith.constant 0 : i32
    %c0_i32_1 = arith.constant 0 : i32
    return %c0_i32, %c0_i32_0 : i32, i32
  }
  func.func @transform_5(%arg0: i32) -> (i32, i32) {
    %c0_i32 = arith.constant 0 : i32
    %c0_i32_0 = arith.constant 0 : i32
    %c0_i32_1 = arith.constant 0 : i32
    return %c0_i32, %c0_i32_0 : i32, i32
  }
  func.func @transform_6(%arg0: i32) -> (i32, i32) {
    %c0_i32 = arith.constant 0 : i32
    %c0_i32_0 = arith.constant 0 : i32
    return %arg0, %c0_i32 : i32, i32
  }
  func.func @transform_7(%arg0: i32) -> (i32, i32) {
    %c0_i32 = arith.constant 0 : i32
    %c0_i32_0 = arith.constant 0 : i32
    return %c0_i32, %arg0 : i32, i32
  }
}

</mosaic_0001>

<bundles_post_ra>
// kernel: tpu_custom_call.1
= control target key start
LH: loop header
LB: loop body
LE: loop exit
PB: predicated region body
PF: predicated region fallthrough
CT: control target
= control target key end

     0   :  { %vm38_vm0 = vcmask 1041408   ;;  %vm34_vm1 = vcmask 31744   ;;  %s306_s0 = inlined_call_operand.vmem [shape: bf16[8,4], index: 0, kind: input, shape index: {}]   ;;  %s307_s1 = inlined_call_operand.vmem [shape: f32[8,4], index: 1, kind: input, shape index: {}]   ;;  %s308_s2 = inlined_call_operand.vmem [shape: bf16[4,64], index: 2, kind: input, shape index: {}]   ;;  %s309_s3 = inlined_call_operand.vmem [shape: f32[1,64], index: 3, kind: input, shape index: {}]   ;;  %s310_s4 = inlined_call_operand.vmem [shape: bf16[64,8], index: 4, kind: input, shape index: {}]   ;;  %s311_s5 = inlined_call_operand.vmem [shape: f32[1,8], index: 5, kind: input, shape index: {}]   ;;  %s312_s6 = inlined_call_operand.vmem [shape: f32[8,4], index: 6, kind: output, shape index: {0}]   ;;  %s313_s7 = inlined_call_operand.hbm [shape: f32[1,8], index: 7, kind: output, shape index: {1}]  }
   0x1   :  { %v29_v0 = vld [vmem:[%s308_s2] sm:$0x3]  ;;  %v192_v3 = vld [vmem:[%s310_s4 + $0x18] sm:$0xff] }
   0x2   :  { %v40_v1 = vsel %vm38_vm0, %v29_v0, 0  ;;  %v27_v2 = vld [vmem:[%s306_s0] sm:$0xf] }
   0x3   :  { %49 = vmatpush.bf16.msra.mxu0 %v40_v1 }
   0x4   :  { %13 = vsyncpa [#allocation3], 0  ;;  %101 = vmatpush.bf16.msra.mxu1 %v192_v3  ;;  %v191_v4 = vld [vmem:[%s310_s4 + $0x10] sm:$0xff]  ;;  %v190_v5 = vld [vmem:[%s310_s4 + $0x8] sm:$0xff]  ;;  %vm93_vm2 = vcmask 523264   ;;  %v227_v20 = vmov 1.0  }
   0x5   :  { %v189_v6 = vld [vmem:[%s310_s4] sm:$0xff]  ;;  %s226_s4 = smov 124   ;;  %s228_s17 = smov [#allocation2]   ;;  %vm147_vm3 = vcmask 57344  }
   0x6   :  { %169 = vmatmul.msk.bf16.vlgmr.msra.gmra.mxu0 %vm34_vm1, %v27_v2  ;;  %v196_v7 = vld [vmem:[%s309_s3] ss:$0 sm:$0xff]  ;;  %s156_s18 = sshll.u32 %s228_s17, 4  ;;  %s158_s21 = sshll.u32 %s313_s7, 4  ;;  %s157_s18 = int_to_ptr.vmem [resolvable:$true] %s156_s18  ;;  %s159_s21 = int_to_ptr.hbm [resolvable:$true] %s158_s21 }
   0x7   :  { %v197_v13 = vld [vmem:[%s311_s5] ss:$0 sm:$0xff] }
   0x8   :  { %102 = vmatpush.bf16.msra.mxu1 %v191_v4  ;;  %v28_v21 = vld [vmem:[%s307_s1] sm:$0xff] }
   0xc   :  { %103 = vmatpush.bf16.msra.mxu1 %v190_v5 }
  0x10   :  { %104 = vmatpush.bf16.msra.mxu1 %v189_v6 }
  0x83   :  { %v51_v8 = vpop.f32.mrf.mxu0 }
  0x84   :  { %v52_v9 = vadd.f32 %v196_v7, %v51_v8 }
  0x86   :  { %v55_v10 = vmax.f32 %v52_v9, 0.0 }
  0x88   :  { %v56_v11 = vpack.c.bf16 %v55_v10, %v55_v10 }
  0x8a   :  { %186 = vmatmul.msk.bf16.vlgmr.msra.gmra.mxu1 %vm93_vm2, %v56_v11 }
  0x8b   :  { %v53_v12 = vpop.f32.mrf.mxu0 }
 0x107   :  { %v106_v14 = vpop.f32.mrf.mxu1 }
 0x108   :  { %v107_v15 = vadd.f32 %v197_v13, %v106_v14 }
 0x10a   :  { %v110_v16 = vmul.f32 1.442695, %v107_v15  ;;  %120 = vrot.lane.b32.xlu0 %v107_v15, %s226_s4 }
 0x10c   :  { %198 = vpow2.f32 %v110_v16 }
 0x10f   :  { %v108_v17 = vpop.f32.mrf.mxu1 }
 0x112   :  { %v199_v18 = vpop.eup %198 }
 0x113   :  { %113 = vrot.lane.b32.xlu0 %v199_v18, %s226_s4 }
 0x17c   :  { %v121_v19 = vpop.permute.xlu0 %120 }
 0x17d   :  { %187 = vmatpush.xpose.msk.msra.mxu2 %vm34_vm1, %v121_v19 }
 0x180   :  { %188 = vmatmul.msk.f32.vlgmr.msra.gmra.mxu2 %vm34_vm1, %v227_v20 }
 0x185   :  { %v114_v22 = vpop.permute.xlu0 %113 }
 0x186   :  { %v116_v23 = vmul.f32 %v114_v22, %v28_v21 }
 0x188   :  { %v117_v24 = vadd.f32 %v116_v23, %v107_v15 }
 0x18a   :  { %118 = vst.msk [vmem:[%s312_s6] sm:$0xff] %vm34_vm1, %v117_v24 }
 0x203   :  { %v144_v25 = vpop.f32.mrf.mxu2 }
 0x204   :  { %148 = vst.msk [vmem:[#allocation2] sm:$0x1] %vm147_vm3, %v144_v25 }
 0x205   :  { %161 = dma.vmem_to_hbm [thread:$0]  %s157_s18, 16, %s159_s21, [#allocation3]  }
 0x206   :  { %224 = dma.done.wait [#allocation3], 16  }
 0x207   :  { %225 = vsyncadd [#allocation3], 4294967280 }
 0x208   :  { %168 = vsyncpa [#allocation3], 1 }

</bundles_post_ra>
